<compile_context>
chip_gen: v5e
topology: v5e:2x2
jax: 0.10.0
libtpu: 0.0.40
codegen_flags: <defaults>
</compile_context>

<pallas_src>
import functools
import math

import jax
import jax.numpy as jnp
from jax.experimental import pallas as pl
from jax.experimental.pallas import tpu as pltpu


_MASK_VALUE = -1e30                 # applied while scores are still f32 (never downcast)
_VMEM_LIMIT = 48 * 1024 * 1024      # explicit limit, sized with headroom for v7x's 64 MiB


def _pick_tile(n, target):
    """Largest multiple-of-8 divisor of n that is <= target, else n (full extent)."""
    if n <= target:
        return n
    for t in range(target, 7, -1):
        if t % 8 == 0 and n % t == 0:
            return t
    return n


# ---------------------------------------------------------------------------
# Tiled matmul + bias (used for both the QKV and output projections).
# ---------------------------------------------------------------------------
def _matmul_bias_kernel(x_ref, w_ref, b_ref, o_ref):
    x = x_ref[...].astype(jnp.bfloat16)          # bf16 MXU inputs
    acc = jnp.dot(x, w_ref[...], preferred_element_type=jnp.float32)
    o_ref[...] = (acc + b_ref[...]).astype(o_ref.dtype)


def _matmul_bias(x2d, w_bf16, bias_f32, out_dtype, *, row_tile=512):
    rows, k = x2d.shape
    n = w_bf16.shape[1]
    tm = _pick_tile(rows, row_tile)
    cost = pl.CostEstimate(
        flops=2 * rows * k * n,
        transcendentals=0,
        bytes_accessed=int(x2d.size * jnp.dtype(x2d.dtype).itemsize
                           + w_bf16.size * 2
                           + bias_f32.size * 4
                           + rows * n * jnp.dtype(out_dtype).itemsize),
    )
    return pl.pallas_call(
        _matmul_bias_kernel,
        out_shape=jax.ShapeDtypeStruct((rows, n), out_dtype),
        grid=(rows // tm,),
        in_specs=[
            pl.BlockSpec((tm, k), lambda i: (i, 0)),     # activations, row-tiled
            pl.BlockSpec((k, n), lambda i: (0, 0)),      # weights (bf16 at rest, no re-DMA)
            pl.BlockSpec((1, n), lambda i: (0, 0)),      # bias (f32)
        ],
        out_specs=pl.BlockSpec((tm, n), lambda i: (i, 0)),   # lane-dense (tm, n) slabs
        compiler_params=pltpu.CompilerParams(
            dimension_semantics=("parallel",),
            vmem_limit_bytes=_VMEM_LIMIT,
        ),
        cost_estimate=cost,
    )(x2d, w_bf16, bias_f32)


# ---------------------------------------------------------------------------
# Flash-attention forward with online softmax and causal-block skipping.
# ---------------------------------------------------------------------------
def _flash_kernel(q_ref, k_ref, v_ref, o_ref, m_sc, l_sc, acc_sc, *, tq, tk, scale):
    qi = pl.program_id(1)
    ki = pl.program_id(2)

    @pl.when(ki == 0)
    def _init():
        m_sc[...] = jnp.full(m_sc.shape, -jnp.inf, dtype=m_sc.dtype)
        l_sc[...] = jnp.zeros(l_sc.shape, dtype=l_sc.dtype)
        acc_sc[...] = jnp.zeros(acc_sc.shape, dtype=acc_sc.dtype)

    q_start = qi * tq
    k_start = ki * tk
    has_visible_keys = k_start <= q_start + (tq - 1)        # not entirely above diagonal
    fully_visible = k_start + (tk - 1) <= q_start           # entirely at/below diagonal

    def update(apply_mask):
        # Scale folded into q (T*hd multiplies instead of T*T).
        q = (q_ref[0] * scale).astype(jnp.bfloat16)          # (H, tq, hd)
        k = k_ref[0].astype(jnp.bfloat16)                    # (H, tk, hd)
        v = v_ref[0].astype(jnp.bfloat16)                    # (H, tk, hd)

        s = jnp.einsum("hqd,hkd->hqk", q, k,
                       preferred_element_type=jnp.float32)   # (H, tq, tk) f32
        if apply_mask:                                       # only diagonal blocks
            row = q_start + jax.lax.broadcasted_iota(jnp.int32, (tq, tk), 0)
            col = k_start + jax.lax.broadcasted_iota(jnp.int32, (tq, tk), 1)
            s = jnp.where((row >= col)[None, :, :], s, _MASK_VALUE)

        m_prev = m_sc[...]                                   # f32 softmax stats
        m_new = jnp.maximum(m_prev, jnp.max(s, axis=-1, keepdims=True))
        alpha = jnp.exp(m_prev - m_new)
        p = jnp.exp(s - m_new)
        l_sc[...] = alpha * l_sc[...] + jnp.sum(p, axis=-1, keepdims=True)
        acc_sc[...] = alpha * acc_sc[...] + jnp.einsum(
            "hqk,hkd->hqd", p.astype(jnp.bfloat16), v,
            preferred_element_type=jnp.float32)
        m_sc[...] = m_new

    # Diagonal blocks: need the iota compare + where mask.
    @pl.when(jnp.logical_and(has_visible_keys, jnp.logical_not(fully_visible)))
    def _diag():
        update(apply_mask=True)

    # Blocks strictly below the diagonal: no mask work at all.
    @pl.when(fully_visible)
    def _below():
        update(apply_mask=False)

    # Blocks strictly above the diagonal contribute nothing -> no dots issued,
    # and (via the clamped K/V index_map) no new K/V DMAs either.

    @pl.when(ki == pl.num_programs(2) - 1)
    def _finalize():
        inv_l = pl.reciprocal(l_sc[...], approx=True)        # EUP slot, ~free
        o_ref[0] = (acc_sc[...] * inv_l).astype(o_ref.dtype)


def _flash_attention(q, k, v, *, q_tile=256, kv_tile=256):
    B, H, T, hd = q.shape
    tq = _pick_tile(T, q_tile)
    tk = _pick_tile(T, kv_tile)
    scale = 1.0 / math.sqrt(hd)
    nq = T // tq
    nk = T // tk

    # Causal DMA-skip: for q tile qi, the last kv block with any visible keys is
    # (qi*tq + tq - 1) // tk.  Clamping the kv block index there means the block
    # index does not change across the masked-out (above-diagonal) grid steps, so
    # Pallas issues no new K/V copies for them.
    def q_index_map(b, qi, ki):
        return (b, 0, qi, 0)

    def kv_index_map(b, qi, ki):
        last_visible = (qi * tq + (tq - 1)) // tk
        return (b, 0, jnp.minimum(ki, last_visible), 0)

    cost = pl.CostEstimate(
        flops=B * H * T * T * hd * 2,                        # ~causal half of 2 matmuls
        transcendentals=B * H * T * T // 2,                  # exp
        bytes_accessed=int(2 * B * H * T * hd * 2            # q + o (bf16)
                           + 2 * B * H * T * hd * 2 * nq),   # k + v reread per q-tile
    )
    kernel = functools.partial(_flash_kernel, tq=tq, tk=tk, scale=scale)
    return pl.pallas_call(
        kernel,
        out_shape=jax.ShapeDtypeStruct((B, H, T, hd), q.dtype),
        grid=(B, nq, nk),
        in_specs=[
            pl.BlockSpec((1, H, tq, hd), q_index_map),
            pl.BlockSpec((1, H, tk, hd), kv_index_map),
            pl.BlockSpec((1, H, tk, hd), kv_index_map),
        ],
        out_specs=pl.BlockSpec((1, H, tq, hd), q_index_map),
        scratch_shapes=[
            pltpu.VMEM((H, tq, 1), jnp.float32),   # m (running max)
            pltpu.VMEM((H, tq, 1), jnp.float32),   # l (running denom)
            pltpu.VMEM((H, tq, hd), jnp.float32),  # acc
        ],
        compiler_params=pltpu.CompilerParams(
            # batch + q-tiles parallel (feeds both v7x TensorCores), kv axis is the reduction
            dimension_semantics=("parallel", "parallel", "arbitrary"),
            vmem_limit_bytes=_VMEM_LIMIT,
        ),
        cost_estimate=cost,
    )(q, k, v)


# ---------------------------------------------------------------------------
# Full module forward.
# ---------------------------------------------------------------------------
def causal_self_attention(x, wqkv, bqkv, wproj, bproj, n_head):
    B, T, C = x.shape
    assert C % n_head == 0
    hd = C // n_head

    # Weights at rest in bf16 (halves weight VMEM buffers); biases stay f32.
    wqkv_bf16 = wqkv.astype(jnp.bfloat16)
    wproj_bf16 = wproj.astype(jnp.bfloat16)
    bqkv2 = bqkv.reshape(1, 3 * C).astype(jnp.float32)
    bproj2 = bproj.reshape(1, C).astype(jnp.float32)

    # 1) Fused QKV projection -> bf16 (lane-dense (rows, 3C) output).
    #    Activations cast to bf16 up front: the kernel feeds bf16 to the MXU anyway,
    #    so this halves activation HBM traffic with no extra precision loss.
    x2d = x.reshape(B * T, C).astype(jnp.bfloat16)
    qkv = _matmul_bias(x2d, wqkv_bf16, bqkv2, jnp.bfloat16)

    # 2) Split heads: pure layout glue in the wrapper (like view/transpose in PyTorch).
    qkv = qkv.reshape(B, T, 3, n_head, hd)
    q = qkv[:, :, 0].transpose(0, 2, 1, 3)   # (B, H, T, hd)
    k = qkv[:, :, 1].transpose(0, 2, 1, 3)
    v = qkv[:, :, 2].transpose(0, 2, 1, 3)

    # 3) Flash attention (causal) with online softmax.
    y = _flash_attention(q, k, v)

    # 4) Merge heads (layout glue) and apply the output projection.
    y2d = y.transpose(0, 2, 1, 3).reshape(B * T, C)
    out = _matmul_bias(y2d, wproj_bf16, bproj2, x.dtype)
    return out.reshape(B, T, C)


def _reference(x, wqkv, bqkv, wproj, bproj, n_head):
    """Pure-JAX f32 reference mirroring the PyTorch forward."""
    B, T, C = x.shape
    hd = C // n_head
    qkv = x @ wqkv + bqkv
    q, k, v = jnp.split(qkv, 3, axis=-1)
    q = q.reshape(B, T, n_head, hd).transpose(0, 2, 1, 3)
    k = k.reshape(B, T, n_head, hd).transpose(0, 2, 1, 3)
    v = v.reshape(B, T, n_head, hd).transpose(0, 2, 1, 3)
    s = jnp.einsum("bhqd,bhkd->bhqk", q, k) / math.sqrt(hd)
    mask = jnp.tril(jnp.ones((T, T), dtype=bool))
    s = jnp.where(mask, s, -jnp.inf)
    p = jax.nn.softmax(s, axis=-1)
    y = jnp.einsum("bhqk,bhkd->bhqd", p, v)
    y = y.transpose(0, 2, 1, 3).reshape(B, T, C)
    return y @ wproj + bproj


if __name__ == "__main__":
    B, T, C, n_head = 2, 8, 32, 4

    key = jax.random.PRNGKey(0)
    kx, k1, k2, k3, k4 = jax.random.split(key, 5)
    x = jax.random.normal(kx, (B, T, C), dtype=jnp.float32)

    # Deterministic parameter init (shapes from nn.Linear in __init__, stored (in, out)).
    wqkv = jax.random.normal(k1, (C, 3 * C), dtype=jnp.float32) * 0.02
    bqkv = jax.random.normal(k2, (3 * C,), dtype=jnp.float32) * 0.02
    wproj = jax.random.normal(k3, (C, C), dtype=jnp.float32) * 0.02
    bproj = jax.random.normal(k4, (C,), dtype=jnp.float32) * 0.02

    out = causal_self_attention(x, wqkv, bqkv, wproj, bproj, n_head)
    out = jax.block_until_ready(out)

    ref = _reference(x, wqkv, bqkv, wproj, bproj, n_head)
    assert out.shape == (B, T, C)
    # bf16 MXU inputs + approx reciprocal -> modest tolerance vs f32 reference.
    assert jnp.allclose(out, ref, atol=2e-2, rtol=2e-2), "mismatch vs reference"

    print("KERNEL_OK")
</pallas_src>

<mosaic_0001>
module attributes {stable_mosaic.version = 11 : i64} {
  func.func @_matmul_bias_kernel(%arg0: i32, %arg1: memref<16x32xbf16, #tpu.memory_space<vmem>>, %arg2: memref<32x96xbf16, #tpu.memory_space<vmem>>, %arg3: memref<1x96xf32, #tpu.memory_space<vmem>>, %arg4: memref<16x96xbf16, #tpu.memory_space<vmem>>) attributes {dimension_semantics = [#tpu.dimension_semantics<parallel>], iteration_bounds = array<i64: 1>, scalar_prefetch = 0 : i64, scratch_operands = 0 : i64, tpu.core_type = #tpu.core_type<tc>, window_params = [{transform_indices = @transform_0, window_bounds = array<i64: 16, 32>}, {pipeline_mode = #tpu.pipeline_mode<synchronous>, transform_indices = @transform_1, window_bounds = array<i64: 32, 96>}, {pipeline_mode = #tpu.pipeline_mode<synchronous>, transform_indices = @transform_2, window_bounds = array<i64: 1, 96>}, {transform_indices = @transform_3, window_bounds = array<i64: 16, 96>}]} {
    %c0 = arith.constant 0 : index
    %c0_0 = arith.constant 0 : index
    %0 = vector.load %arg1[%c0, %c0_0] : memref<16x32xbf16, #tpu.memory_space<vmem>>, vector<16x32xbf16>
    %c0_1 = arith.constant 0 : index
    %c0_2 = arith.constant 0 : index
    %1 = vector.load %arg2[%c0_1, %c0_2] : memref<32x96xbf16, #tpu.memory_space<vmem>>, vector<32x96xbf16>
    %cst = arith.constant dense<0.000000e+00> : vector<16x96xf32>
    %2 = tpu.matmul %0, %1, %cst {dimension_numbers = #tpu.dot_dimension_numbers<[1], [0], [0], [1], [0, 0, 1, 1], [], []>} : vector<16x32xbf16>, vector<32x96xbf16>, vector<16x96xf32> -> vector<16x96xf32>
    %c0_3 = arith.constant 0 : index
    %c0_4 = arith.constant 0 : index
    %3 = vector.load %arg3[%c0_3, %c0_4] : memref<1x96xf32, #tpu.memory_space<vmem>>, vector<1x96xf32>
    %4 = vector.broadcast %3 : vector<1x96xf32> to vector<16x96xf32>
    %5 = arith.addf %2, %4 : vector<16x96xf32>
    %6 = arith.truncf %5 : vector<16x96xf32> to vector<16x96xbf16>
    %c0_5 = arith.constant 0 : index
    %c0_6 = arith.constant 0 : index
    %7 = vector.load %arg4[%c0_5, %c0_6] : memref<16x96xbf16, #tpu.memory_space<vmem>>, vector<16x96xbf16>
    tpu.vector_store %arg4[%c0_5, %c0_6], %6 {strides = array<i32>} : memref<16x96xbf16, #tpu.memory_space<vmem>>, vector<16x96xbf16>,
    return
  }
  func.func @transform_0(%arg0: i32) -> (i32, i32) {
    %c0_i32 = arith.constant 0 : i32
    %c0_i32_0 = arith.constant 0 : i32
    return %arg0, %c0_i32 : i32, i32
  }
  func.func @transform_1(%arg0: i32) -> (i32, i32) {
    %c0_i32 = arith.constant 0 : i32
    %c0_i32_0 = arith.constant 0 : i32
    %c0_i32_1 = arith.constant 0 : i32
    return %c0_i32, %c0_i32_0 : i32, i32
  }
  func.func @transform_2(%arg0: i32) -> (i32, i32) {
    %c0_i32 = arith.constant 0 : i32
    %c0_i32_0 = arith.constant 0 : i32
    %c0_i32_1 = arith.constant 0 : i32
    return %c0_i32, %c0_i32_0 : i32, i32
  }
  func.func @transform_3(%arg0: i32) -> (i32, i32) {
    %c0_i32 = arith.constant 0 : i32
    %c0_i32_0 = arith.constant 0 : i32
    return %arg0, %c0_i32 : i32, i32
  }
}

</mosaic_0001>

<bundles_post_ra>
// kernel: tpu_custom_call.1
= control target key start
LH: loop header
LB: loop body
LE: loop exit
PB: predicated region body
PF: predicated region fallthrough
CT: control target
= control target key end

     0   :  { %8 = vsyncpa [#allocation3], 0  ;;  %s264_s0 = inlined_call_operand.hbm [shape: bf16[16,32], index: 0, kind: input, shape index: {}]   ;;  %s265_s1 = inlined_call_operand.hbm [shape: bf16[32,96], index: 1, kind: input, shape index: {}]   ;;  %s266_s2 = inlined_call_operand.vmem [shape: f32[1,96], index: 2, kind: input, shape index: {}]   ;;  %s267_s3 = inlined_call_operand.hbm [shape: bf16[16,96], index: 3, kind: output, shape index: {}]  }
   0x1   :  { %9 = vsyncpa [#allocation6], 0 }
   0x2   :  { %10 = vsyncpa [#allocation4], 0  ;;  %s15_s14 = sshll.u32 %s264_s0, 4  ;;  %s218_s15 = smov [#allocation2]   ;;  %s16_s14 = int_to_ptr.hbm [resolvable:$true] %s15_s14 }
   0x3   :  { %s17_s16 = sshll.u32 %s218_s15, 4  ;;  %s28_s19 = sshll.u32 %s265_s1, 4  ;;  %s18_s16 = int_to_ptr.vmem [resolvable:$true] %s17_s16  ;;  %s29_s19 = int_to_ptr.hbm [resolvable:$true] %s28_s19 }
   0x4   :  { %s219_s20 = smov 64   ;;  %s220_s21 = smov 4  }
   0x5   :  { %23 = dma.hbm_to_vmem [thread:$0]  %s16_s14, 128, %s18_s16, [#allocation3], %s219_s20, %s219_s20, %s220_s21  }
   0x6   :  { %s221_s22 = smov [#allocation5]  }
   0x7   :  { %s30_s23 = sshll.u32 %s221_s22, 4  ;;  %s31_s23 = int_to_ptr.vmem [resolvable:$true] %s30_s23 }
   0x8   :  { %36 = dma.hbm_to_vmem [thread:$0]  %s29_s19, 256, %s31_s23, [#allocation6], %s219_s20, %s219_s20, %s220_s21  }
   0x9   :  { %212 = dma.done.wait [#allocation3], 128  }
   0xa   :  { %213 = vsyncadd [#allocation3], 4294967168 }
   0xb   :  { %214 = dma.done.wait [#allocation6], 256  }
   0xc   :  { %215 = vsyncadd [#allocation6], 4294967040  ;;  %v133_v0 = vld [vmem:[#allocation5 + $0x8] sm:$0xff]  ;;  %v132_v1 = vld [vmem:[#allocation5] sm:$0xff]  ;;  %vm75_vm0 = vcmask 261120   ;;  %vm95_vm1 = vcmask 781312  }
   0xd   :  { %85 = vmatpush.bf16.msra.mxu0 %v133_v0  ;;  %v131_v2 = vld [vmem:[#allocation2] sm:$0xff]  ;;  %s222_s24 = smov [#allocation7]   ;;  %s104_s28 = sshll.u32 %s267_s3, 4  ;;  %s105_s28 = int_to_ptr.hbm [resolvable:$true] %s104_s28 }
   0xe   :  { %v139_v3 = vld [vmem:[%s266_s2] ss:$0 sm:$0xff]  ;;  %s102_s25 = sshll.u32 %s222_s24, 4  ;;  %s103_s25 = int_to_ptr.vmem [resolvable:$true] %s102_s25 }
  0x11   :  { %86 = vmatpush.bf16.msra.mxu0 %v132_v1 }
  0x14   :  { %130 = vmatmul.msk.bf16.vlgmr.msra.gmra.mxu0 %vm75_vm0, %v131_v2 }
  0x91   :  { %v88_v4 = vpop.f32.mrf.mxu0 }
  0x92   :  { %v89_v5 = vadd.f32 %v139_v3, %v88_v4 }
  0x94   :  { %v93_v6 = vpack.c.bf16 %v89_v5, %v89_v5 }
  0x96   :  { %96 = vst.msk [vmem:[#allocation7] sm:$0xf] %vm95_vm1, %v93_v6 }
  0x99   :  { %v90_v7 = vpop.f32.mrf.mxu0 }
  0x9a   :  { %v91_v8 = vadd.f32 %v139_v3, %v90_v7 }
  0x9c   :  { %v94_v9 = vpack.c.bf16 %v91_v8, %v91_v8 }
  0x9e   :  { %97 = vst.msk [vmem:[#allocation7 + $0x4] sm:$0xf] %vm95_vm1, %v94_v9 }
  0x9f   :  { %110 = dma.vmem_to_hbm [thread:$0]  %s103_s25, 128, %s105_s28, [#allocation4], %s219_s20, %s219_s20, %s220_s21  }
  0xa0   :  { %216 = dma.done.wait [#allocation4], 128  }
  0xa1   :  { %217 = vsyncadd [#allocation4], 4294967168 }
  0xa2   :  { %115 = vsyncpa [#allocation3], 1 }
  0xa3   :  { %116 = vsyncpa [#allocation6], 1 }
  0xa4   :  { %117 = vsyncpa [#allocation4], 1 }

</bundles_post_ra>
